<compile_context>
chip_gen: v5e
topology: v5e:2x2
jax: 0.10.0
libtpu: 0.0.40
codegen_flags: <defaults>
</compile_context>

<pallas_src>
import functools
import math

import jax
import jax.numpy as jnp
from jax.experimental import pallas as pl
from jax.experimental.pallas import tpu as pltpu

LANES = 128
MAX_TILE_ROWS = 4096  # (4096, 128) f32 = 2 MiB per input per pipeline buffer


def _awing_kernel(y_ref, t_ref, loss_ref, acc_ref, *,
                  omega, epsilon, theta, alpha, inv_n):
    """One (tile_rows, 128) tile of the flattened outputs/labels.

    acc_ref  (VMEM, (8, 128) f32): vreg-shaped partial-sum accumulator.
    loss_ref (SMEM, (1, 1) f32):  final scalar mean loss, written on last step.
    """
    step = pl.program_id(0)

    @pl.when(step == 0)
    def _():
        acc_ref[...] = jnp.zeros_like(acc_ref)

    y = y_ref[...].astype(jnp.float32)   # outputs (predictions)
    t = t_ref[...].astype(jnp.float32)   # labels

    diff = jnp.abs(y - t)
    am = alpha - t                        # alpha - labels
    log_toe = math.log(theta / epsilon)   # python-float constant

    # (theta/eps)^(alpha - labels) via a single exp (constant log base).
    pow_tl = jnp.exp(am * log_toe)
    lg1p_tl = jnp.log1p(pow_tl)
    # A = omega * am * p / ((1+p) * theta)   (since (t/e)^(am-1)/e == p/theta)
    a_term = (omega / theta) * am * (pow_tl / (1.0 + pow_tl))
    # A*diff - C == A*(diff - theta) + omega*log1p(p)
    loss_above = a_term * (diff - theta) + omega * lg1p_tl
    loss_below = omega * jnp.log1p(jnp.power(diff * (1.0 / epsilon), am))
    loss = jnp.where(diff >= theta, loss_above, loss_below)

    # Fold the (tile_rows, 128) tile into one vreg: pure elementwise vreg adds
    # (rows are grouped 8 at a time, matching the (8,128) vreg layout).
    tile_rows = loss.shape[0]
    acc_ref[...] += jnp.sum(loss.reshape(tile_rows // 8, 8, LANES), axis=0)

    @pl.when(step == pl.num_programs(0) - 1)
    def _():
        loss_ref[0, 0] = jnp.sum(acc_ref[...]) * inv_n


def awing_loss(outputs, labels, omega=14.0, epsilon=1.0, theta=0.5, alpha=2.1):
    assert outputs.shape == labels.shape
    n = outputs.size

    rows = pl.cdiv(n, LANES)
    num_tiles = pl.cdiv(rows, MAX_TILE_ROWS)
    tile_rows = ((pl.cdiv(rows, num_tiles) + 7) // 8) * 8   # multiple of 8
    padded_rows = num_tiles * tile_rows
    padded = padded_rows * LANES

    def to_slab(x):
        flat = x.reshape(-1)
        if padded != n:
            # Zero padding adds exactly zero loss:
            # diff == 0, labels == 0 -> below-theta branch -> omega*log1p(0) = 0.
            flat = jnp.zeros((padded,), flat.dtype).at[:n].set(flat)
        return flat.reshape(padded_rows, LANES)

    y2d = to_slab(outputs)
    t2d = to_slab(labels)

    kernel = functools.partial(
        _awing_kernel,
        omega=float(omega), epsilon=float(epsilon),
        theta=float(theta), alpha=float(alpha),
        inv_n=1.0 / float(n))

    # TODO(synk): on v7x a leading size-2 "parallel" grid axis (with per-core
    # partial outputs) could split the row range across the two TensorCores;
    # kept single-core here for portability across v5e/v6e/v7x.
    loss = pl.pallas_call(
        kernel,
        out_shape=jax.ShapeDtypeStruct((1, 1), jnp.float32),
        grid_spec=pltpu.PrefetchScalarGridSpec(
            num_scalar_prefetch=0,
            grid=(num_tiles,),
            in_specs=[
                pl.BlockSpec((tile_rows, LANES), lambda i: (i, 0)),
                pl.BlockSpec((tile_rows, LANES), lambda i: (i, 0)),
            ],
            out_specs=pl.BlockSpec(memory_space=pltpu.SMEM),
            scratch_shapes=[pltpu.VMEM((8, LANES), jnp.float32)],
        ),
        compiler_params=pltpu.CompilerParams(
            dimension_semantics=("arbitrary",),
            vmem_limit_bytes=32 * 1024 * 1024),
    )(y2d, t2d)

    return loss[0, 0]


def awing_loss_ref(outputs, labels, omega=14.0, epsilon=1.0, theta=0.5,
                   alpha=2.1):
    y = outputs.astype(jnp.float32)
    t = labels.astype(jnp.float32)
    diff = jnp.abs(y - t)
    A = (omega * (1.0 / (1.0 + (theta / epsilon) ** (alpha - t)))
         * (alpha - t) * (theta / epsilon) ** (alpha - t - 1.0)
         * (1.0 / epsilon))
    C = theta * A - omega * jnp.log(1.0 + (theta / epsilon) ** (alpha - t))
    loss = jnp.where(diff >= theta,
                     A * diff - C,
                     omega * jnp.log(1.0 + (diff / epsilon) ** (alpha - t)))
    return jnp.mean(loss)


if __name__ == "__main__":
    key = jax.random.PRNGKey(0)
    k1, k2, k3, k4 = jax.random.split(key, 4)

    # Small heatmap-like shapes: batch=2, channels=4, spatial=16x16 (NCHW).
    shape = (2, 4, 16, 16)
    outputs = jax.nn.sigmoid(jax.random.normal(k1, shape, jnp.float32))
    labels = jax.random.uniform(k2, shape, jnp.float32)

    out = jax.block_until_ready(awing_loss(outputs, labels))
    ref = awing_loss_ref(outputs, labels)
    assert jnp.allclose(out, ref, atol=1e-5, rtol=1e-5), (out, ref)

    # Ragged shape that exercises the zero-padding path.
    rshape = (3, 5, 7)
    r_out = jax.nn.sigmoid(jax.random.normal(k3, rshape, jnp.float32))
    r_lab = jax.random.uniform(k4, rshape, jnp.float32)
    out2 = jax.block_until_ready(awing_loss(r_out, r_lab))
    ref2 = awing_loss_ref(r_out, r_lab)
    assert jnp.allclose(out2, ref2, atol=1e-5, rtol=1e-5), (out2, ref2)

    print("KERNEL_OK")
</pallas_src>

<mosaic_0001>
module attributes {stable_mosaic.version = 11 : i64} {
  func.func @_awing_kernel(%arg0: i32, %arg1: memref<16x128xf32, #tpu.memory_space<vmem>>, %arg2: memref<16x128xf32, #tpu.memory_space<vmem>>, %arg3: memref<1x1xf32, #tpu.memory_space<smem>>, %arg4: memref<8x128xf32, #tpu.memory_space<vmem>>) attributes {dimension_semantics = [#tpu.dimension_semantics<arbitrary>], iteration_bounds = array<i64: 1>, scalar_prefetch = 0 : i64, scratch_operands = 1 : i64, tpu.core_type = #tpu.core_type<tc>, window_params = [{transform_indices = @transform_0, window_bounds = array<i64: 16, 128>}, {transform_indices = @transform_1, window_bounds = array<i64: 16, 128>}, {transform_indices = @transform_2, window_bounds = array<i64: 1, 1>}]} {
    %c0_i32 = arith.constant 0 : i32
    %0 = arith.cmpi eq, %arg0, %c0_i32 : i32
    %1 = arith.extui %0 : i1 to i32
    %c0_i32_0 = arith.constant 0 : i32
    %2 = arith.cmpi ne, %1, %c0_i32_0 : i32
    scf.if %2 {
      %cst_19 = arith.constant 0.000000e+00 : f32
      %42 = vector.broadcast %cst_19 : f32 to vector<8x128xf32>
      %c0_20 = arith.constant 0 : index
      %c0_21 = arith.constant 0 : index
      %43 = vector.load %arg4[%c0_20, %c0_21] : memref<8x128xf32, #tpu.memory_space<vmem>>, vector<8x128xf32>
      tpu.vector_store %arg4[%c0_20, %c0_21], %42 {strides = array<i32>} : memref<8x128xf32, #tpu.memory_space<vmem>>, vector<8x128xf32>,
    } else {
    }
    %c0 = arith.constant 0 : index
    %c0_1 = arith.constant 0 : index
    %3 = vector.load %arg1[%c0, %c0_1] : memref<16x128xf32, #tpu.memory_space<vmem>>, vector<16x128xf32>
    %c0_2 = arith.constant 0 : index
    %c0_3 = arith.constant 0 : index
    %4 = vector.load %arg2[%c0_2, %c0_3] : memref<16x128xf32, #tpu.memory_space<vmem>>, vector<16x128xf32>
    %5 = arith.subf %3, %4 : vector<16x128xf32>
    %6 = math.absf %5 : vector<16x128xf32>
    %cst = arith.constant 2.100000e+00 : f32
    %7 = vector.broadcast %cst : f32 to vector<16x128xf32>
    %8 = arith.subf %7, %4 : vector<16x128xf32>
    %cst_4 = arith.constant -0.693147182 : f32
    %9 = vector.broadcast %cst_4 : f32 to vector<16x128xf32>
    %10 = arith.mulf %8, %9 : vector<16x128xf32>
    %11 = math.exp %10 : vector<16x128xf32>
    %12 = math.log1p %11 : vector<16x128xf32>
    %cst_5 = arith.constant 2.800000e+01 : f32
    %13 = vector.broadcast %cst_5 : f32 to vector<16x128xf32>
    %14 = arith.mulf %13, %8 : vector<16x128xf32>
    %cst_6 = arith.constant 1.000000e+00 : f32
    %15 = vector.broadcast %cst_6 : f32 to vector<16x128xf32>
    %16 = arith.addf %15, %11 : vector<16x128xf32>
    %17 = arith.divf %11, %16 : vector<16x128xf32>
    %18 = arith.mulf %14, %17 : vector<16x128xf32>
    %cst_7 = arith.constant 5.000000e-01 : f32
    %19 = vector.broadcast %cst_7 : f32 to vector<16x128xf32>
    %20 = arith.subf %6, %19 : vector<16x128xf32>
    %21 = arith.mulf %18, %20 : vector<16x128xf32>
    %cst_8 = arith.constant 1.400000e+01 : f32
    %22 = vector.broadcast %cst_8 : f32 to vector<16x128xf32>
    %23 = arith.mulf %22, %12 : vector<16x128xf32>
    %24 = arith.addf %21, %23 : vector<16x128xf32>
    %cst_9 = arith.constant 1.000000e+00 : f32
    %25 = vector.broadcast %cst_9 : f32 to vector<16x128xf32>
    %26 = arith.mulf %6, %25 : vector<16x128xf32>
    %27 = math.powf %26, %8 : vector<16x128xf32>
    %28 = math.log1p %27 : vector<16x128xf32>
    %cst_10 = arith.constant 1.400000e+01 : f32
    %29 = vector.broadcast %cst_10 : f32 to vector<16x128xf32>
    %30 = arith.mulf %29, %28 : vector<16x128xf32>
    %cst_11 = arith.constant 5.000000e-01 : f32
    %31 = vector.broadcast %cst_11 : f32 to vector<16x128xf32>
    %32 = arith.cmpf oge, %6, %31 : vector<16x128xf32>
    %33 = arith.select %32, %24, %30 : vector<16x128xi1>, vector<16x128xf32>
    %c0_12 = arith.constant 0 : index
    %c0_13 = arith.constant 0 : index
    %34 = vector.load %arg4[%c0_12, %c0_13] : memref<8x128xf32, #tpu.memory_space<vmem>>, vector<8x128xf32>
    %35 = vector.shape_cast %33 : vector<16x128xf32> to vector<2x8x128xf32>
    %cst_14 = arith.constant dense<0.000000e+00> : vector<8x128xf32>
    %36 = vector.multi_reduction <add>, %35, %cst_14 [0] : vector<2x8x128xf32> to vector<8x128xf32>
    %37 = arith.addf %34, %36 : vector<8x128xf32>
    %c0_15 = arith.constant 0 : index
    %c0_16 = arith.constant 0 : index
    %38 = vector.load %arg4[%c0_15, %c0_16] : memref<8x128xf32, #tpu.memory_space<vmem>>, vector<8x128xf32>
    tpu.vector_store %arg4[%c0_15, %c0_16], %37 {strides = array<i32>} : memref<8x128xf32, #tpu.memory_space<vmem>>, vector<8x128xf32>,
    %c0_i32_17 = arith.constant 0 : i32
    %39 = arith.cmpi eq, %arg0, %c0_i32_17 : i32
    %40 = arith.extui %39 : i1 to i32
    %c0_i32_18 = arith.constant 0 : i32
    %41 = arith.cmpi ne, %40, %c0_i32_18 : i32
    scf.if %41 {
      %c0_19 = arith.constant 0 : index
      %c0_20 = arith.constant 0 : index
      %42 = vector.load %arg4[%c0_19, %c0_20] : memref<8x128xf32, #tpu.memory_space<vmem>>, vector<8x128xf32>
      %43 = vector.shape_cast %42 : vector<8x128xf32> to vector<1x8x128xf32>
      %cst_21 = arith.constant dense<0.000000e+00> : vector<1xf32>
      %44 = vector.multi_reduction <add>, %43, %cst_21 [1, 2] : vector<1x8x128xf32> to vector<1xf32>
      %45 = vector.shape_cast %44 : vector<1xf32> to vector<1x1x1xf32>
      %46 = vector.extract %45[0, 0, 0] : f32 from vector<1x1x1xf32>
      %cst_22 = arith.constant 4.8828125E-4 : f32
      %47 = arith.mulf %46, %cst_22 : f32
      %c0_23 = arith.constant 0 : index
      %c0_24 = arith.constant 0 : index
      %48 = memref.load %arg3[%c0_23, %c0_24] : memref<1x1xf32, #tpu.memory_space<smem>>
      memref.store %47, %arg3[%c0_23, %c0_24] : memref<1x1xf32, #tpu.memory_space<smem>>
    } else {
    }
    return
  }
  func.func @transform_0(%arg0: i32) -> (i32, i32) {
    %c0_i32 = arith.constant 0 : i32
    %c0_i32_0 = arith.constant 0 : i32
    return %arg0, %c0_i32 : i32, i32
  }
  func.func @transform_1(%arg0: i32) -> (i32, i32) {
    %c0_i32 = arith.constant 0 : i32
    %c0_i32_0 = arith.constant 0 : i32
    return %arg0, %c0_i32 : i32, i32
  }
  func.func @transform_2(%arg0: i32) -> (i32, i32) {
    %c0_i32 = arith.constant 0 : i32
    %c0_i32_0 = arith.constant 0 : i32
    %c0_i32_1 = arith.constant 0 : i32
    return %c0_i32, %c0_i32_0 : i32, i32
  }
}

</mosaic_0001>

<bundles_post_ra>
// kernel: tpu_custom_call.1
= control target key start
LH: loop header
LB: loop body
LE: loop exit
PB: predicated region body
PF: predicated region fallthrough
CT: control target
= control target key end

     0   :  { %7 = vsyncpa [#allocation4], 0  ;;  %s833_s0 = inlined_call_operand.hbm [shape: f32[16,128], index: 0, kind: input, shape index: {}]   ;;  %s834_s1 = inlined_call_operand.hbm [shape: f32[16,128], index: 1, kind: input, shape index: {}]   ;;  %s835_s2 = inlined_call_operand.hbm [shape: f32[1,1], index: 2, kind: output, shape index: {}]  }
   0x1   :  { %8 = vsyncpa [#allocation7], 0 }
   0x2   :  { %9 = vsyncpa [#allocation5], 0  ;;  %s14_s11 = sshll.u32 %s833_s0, 4  ;;  %s483_s12 = smov [#allocation3]   ;;  %s15_s11 = int_to_ptr.hbm [resolvable:$true] %s14_s11 }
   0x3   :  { %s16_s13 = sshll.u32 %s483_s12, 4  ;;  %s27_s16 = sshll.u32 %s834_s1, 4  ;;  %s17_s13 = int_to_ptr.vmem [resolvable:$true] %s16_s13  ;;  %s28_s16 = int_to_ptr.hbm [resolvable:$true] %s27_s16 }
   0x4   :  { %s484_s17 = smov 128   ;;  %s485_s18 = smov 8  }
   0x5   :  { %22 = dma.hbm_to_vmem [thread:$0]  %s15_s11, 256, %s17_s13, [#allocation4], %s484_s17, %s484_s17, %s485_s18  }
   0x6   :  { %s486_s19 = smov [#allocation6]  }
   0x7   :  { %s29_s20 = sshll.u32 %s486_s19, 4  ;;  %s30_s20 = int_to_ptr.vmem [resolvable:$true] %s29_s20 }
   0x8   :  { %35 = dma.hbm_to_vmem [thread:$0]  %s28_s16, 256, %s30_s20, [#allocation7], %s484_s17, %s484_s17, %s485_s18  }
   0x9   :  { %477 = dma.done.wait [#allocation4], 256  }
   0xa   :  { %478 = vsyncadd [#allocation4], 4294967040 }
   0xb   :  { %479 = dma.done.wait [#allocation7], 256  }
   0xc   :  { %480 = vsyncadd [#allocation7], 4294967040  ;;  %v49_v0 = vld [vmem:[#allocation3] sm:$0xff]  ;;  %v51_v1 = vld [vmem:[#allocation6] sm:$0xff]  ;;  %s178_s21 = sshll.u32 %s835_s2, 4  ;;  %s489_s24 = smov [#allocation8]   ;;  %s179_s21 = int_to_ptr.hbm [resolvable:$true] %s178_s21 }
   0xd   :  { %v53_v2 = vsub.f32 %v49_v0, %v51_v1  ;;  %v50_v9 = vld [vmem:[#allocation3 + $0x8] sm:$0xff]  ;;  %v52_v10 = vld [vmem:[#allocation6 + $0x8] sm:$0xff]  ;;  %v518_v17 = vsub.f32 2.1, %v51_v1 }
   0xe   :  { %v54_v12 = vsub.f32 %v50_v9, %v52_v10  ;;  %v522_v27 = vsub.f32 2.1, %v52_v10 }
   0xf   :  { %v511_v3 = vand.u32 2147483647, %v53_v2  ;;  %v59_v24 = vmul.f32 -0.6931472, %v518_v17  ;;  %v526_v40 = vand.u32 2147483647, %v518_v17  ;;  %v245_v46 = vceil.f32 %v518_v17 }
  0x10   :  { %v516_v16 = vand.u32 2147483647, %v54_v12  ;;  %v60_v35 = vmul.f32 -0.6931472, %v522_v27  ;;  %v246_v47 = vfloor.f32 %v518_v17  ;;  %vm244_vm1 = vcmp.lt.s32.totalorder %v518_v17, 0 }
  0x11   :  { %v198_v4 = vand.u32 8388607, %v511_v3  ;;  %v194_v14 = vand.u32 2139095040, %v511_v3  ;;  %v61_v32 = vmul.f32 1.442695, %v59_v24  ;;  %v252_v49 = vfloor.f32 %v526_v40 }
  0x12   :  { %v296_v23 = vand.u32 8388607, %v516_v16  ;;  %v63_v43 = vmul.f32 1.442695, %v60_v35  ;;  %v247_v55 = vsel %vm244_vm1, %v245_v46, %v246_v47  ;;  %vm232_vm3 = vweird.f32 %v511_v3 }
  0x13   :  { %v199_v5 = vor.u32 8388608, %v198_v4  ;;  %v195_v20 = vshrl.u32 %v194_v14, 23  ;;  %397 = vpow2.f32 %v61_v32  ;;  %v253_v56 = vcvt.f32.s32 %v252_v49 }
  0x14   :  { %v297_v31 = vor.u32 8388608, %v296_v23  ;;  %399 = vpow2.f32 %v63_v43  ;;  %v292_v57 = vand.u32 2139095040, %v516_v16  ;;  %vm231_vm4 = vcmp.lt.f32.partialorder %v511_v3, 0.0 }
  0x15   :  { %v201_v6 = vand.u32 8388607, %v199_v5  ;;  %v288_v28 = vadd.s32 4294967169, %v195_v20  ;;  %vm229_vm5 = vcmp.eq.f32.partialorder %v511_v3, 1.0  ;;  %vm230_vm6 = vcmp.eq.f32.partialorder %v511_v3, 0.0 }
  0x16   :  { %v299_v39 = vand.u32 8388607, %v297_v31  ;;  %vm240_vm7 = vcmp.eq.f32.partialorder %v526_v40, 2139095040  ;;  %vm248_vm8 = vcmp.ne.f32.partialorder %v518_v17, %v247_v55  ;;  %vm243_vm9 = vcmp.lt.f32.partialorder %v518_v17, 0 }
  0x17   :  { %v202_v7 = vor.u32 1065353216, %v201_v6  ;;  %v206_v36 = vadd.s32 1, %v288_v28  ;;  %vm260_vm10 = vcmp.eq.f32.partialorder %v511_v3, 0  ;;  %v254_v1 = vand.u32 1, %v253_v56  ;;  %vm565_vm12 = vmor %vm248_vm8, %vm240_vm7 }
  0x18   :  { %v531_v48 = vor.u32 1065353216, %v299_v39  ;;  %vm262_vm11 = vcmp.gt.f32.partialorder %v511_v3, 1065353216  ;;  %vm575_vm13 = vmand %vm243_vm9, %vm260_vm10  ;;  %v293_v10 = vshrl.u32 %v292_v57, 23  ;;  %vm259_vm1 = vcmp.lt.f32.partialorder %v511_v3, 0 }
  0x19   :  { %v204_v8 = vmul.f32 0.5, %v202_v7  ;;  %vm203_vm0 = vcmp.ge.f32.partialorder %v202_v7, 1.4142135  ;;  %v536_v52 = vpop.eup %397  ;;  %vm582_vm14 = vmxor %vm243_vm9, %vm262_vm11  ;;  %vm255_vm15 = vcmp.eq.s32.totalorder %v254_v1, 1  ;;  %v487_v20 = vmov 2139095040  }
  0x1a   :  { %v207_v44 = vsel %vm203_vm0, %v206_v36, %v288_v28  ;;  %vm301_vm2 = vcmp.ge.f32.partialorder %v531_v48, 1.4142135  ;;  %v302_v53 = vmul.f32 0.5, %v531_v48  ;;  %v545_v59 = vadd.f32 1.0, %v536_v52  ;;  %v560_v2 = vpop.eup %399  ;;  %vm611_vm8 = vmand %vm259_vm1, %vm565_vm12 }
  0x1b   :  { %v205_v11 = vsel %vm203_vm0, %v204_v8, %v202_v7  ;;  %v227_v51 = vcvt.s32.f32 %v207_v44  ;;  %vm256_vm0 = vmneg %vm565_vm12  ;;  %vm342_vm12 = vcmp.lt.s32.totalorder %v522_v27, 0 }
  0x1c   :  { %v289_v13 = vadd.f32 -1.0, %v205_v11  ;;  %v303_v58 = vsel %vm301_vm2, %v302_v53, %v531_v48  ;;  %401 = vrcp.f32 %v545_v59 }
  0x1d   :  { %v548_v61 = vadd.f32 -1.0, %v303_v58 }
  0x1e   :  { %v209_v15 = vmul.f32 %v289_v13, %v289_v13 }
  0x1f   :  { %v307_v63 = vmul.f32 %v548_v61, %v548_v61 }
  0x20   :  { %v210_v18 = vmul.f32 0.12621109, %v209_v15  ;;  %v212_v19 = vmul.f32 -0.20706727, %v209_v15 }
  0x21   :  { %v308_v6 = vmul.f32 0.12621109, %v307_v63  ;;  %v310_v7 = vmul.f32 -0.20706727, %v307_v63 }
  0x22   :  { %v211_v21 = vadd.f32 0.21545328, %v210_v18  ;;  %v213_v22 = vadd.f32 -0.23896284, %v212_v19  ;;  %v599_v23 = vpop.eup %401 }
  0x23   :  { %v311_v14 = vadd.f32 -0.23896284, %v310_v7 }
  0x24   :  { %v214_v25 = vmul.f32 %v211_v21, %v209_v15  ;;  %v216_v26 = vmul.f32 %v213_v22, %v209_v15  ;;  %v276_v21 = vsel %vm243_vm9, 0, %v487_v20  ;;  %v386_v22 = vadd.s32 4294967169, %v293_v10 }
  0x25   :  { %v314_v19 = vmul.f32 %v311_v14, %v307_v63  ;;  %v277_v31 = vxor.u32 2147483648, %v276_v21  ;;  %v98_v14 = vand.u32 2147483648, %v545_v59 }
  0x26   :  { %v215_v29 = vadd.f32 0.28795174, %v214_v25  ;;  %v217_v30 = vadd.f32 -0.3607037, %v216_v26  ;;  %v605_v26 = vand.u32 2147483647, %v522_v27 }
  0x27   :  { %v315_v25 = vadd.f32 -0.3607037, %v314_v19  ;;  %v304_v36 = vadd.s32 1, %v386_v22 }
  0x28   :  { %v218_v33 = vmul.f32 %v215_v29, %v209_v15  ;;  %v220_v34 = vmul.f32 %v217_v30, %v209_v15  ;;  %v488_v29 = vmov 0  }
  0x29   :  { %v266_v35 = vsel %vm243_vm9, 2139095040, %v488_v29  ;;  %v305_v53 = vsel %vm301_vm2, %v304_v36, %v386_v22  ;;  %vm263_vm9 = vcmp.eq.f32.partialorder %v511_v3, 2139095040  ;;  %vm338_vm2 = vcmp.eq.f32.partialorder %v605_v26, 2139095040 }
  0x2a   :  { %v219_v37 = vadd.f32 0.48090908, %v218_v33  ;;  %v221_v38 = vadd.f32 -0.72134733, %v220_v34  ;;  %v318_v33 = vmul.f32 %v315_v25, %v307_v63  ;;  %v88_v34 = vmul.f32 %v599_v23, %v545_v59 }
  0x2c   :  { %v222_v41 = vmul.f32 %v219_v37, %v209_v15  ;;  %v224_v42 = vmul.f32 %v289_v13, %v221_v38  ;;  %v587_v15 = vadd.f32 1.0, %v560_v2  ;;  %v319_v39 = vadd.f32 -0.72134733, %v318_v33 }
  0x2e   :  { %v223_v45 = vadd.f32 1.442695, %v222_v41  ;;  %v343_v41 = vceil.f32 %v522_v27  ;;  %v111_v33 = vand.u32 2147483647, %v587_v15 }
  0x30   :  { %v225_v50 = vadd.f32 %v224_v42, %v223_v45  ;;  %v344_v42 = vfloor.f32 %v522_v27  ;;  %v350_v45 = vfloor.f32 %v605_v26 }
  0x32   :  { %v226_v54 = vmul.f32 %v289_v13, %v225_v50  ;;  %v309_v13 = vadd.f32 0.21545328, %v308_v6  ;;  %v322_v50 = vmul.f32 %v548_v61, %v319_v39  ;;  %v345_v55 = vsel %vm342_vm12, %v343_v41, %v344_v42 }
  0x33   :  { %v351_v58 = vcvt.f32.s32 %v350_v45  ;;  %vm341_vm12 = vcmp.lt.f32.partialorder %v522_v27, 0  ;;  %v77_v39 = vmul.f32 -0.5, %v560_v2 }
  0x34   :  { %v228_v60 = vadd.f32 %v227_v51, %v226_v54  ;;  %v312_v18 = vmul.f32 %v309_v13, %v307_v63  ;;  %v190_v13 = vadd.f32 -0.5, %v511_v3 }
  0x36   :  { %v233_v62 = vsel %vm232_vm3, %v511_v3, %v228_v60  ;;  %vm271_vm3 = vmor %vm575_vm13, %vm582_vm14  ;;  %v313_v24 = vadd.f32 0.28795174, %v312_v18  ;;  %vm281_vm13 = vcmp.ne.f32.partialorder %v511_v3, %v511_v3  ;;  %v89_v60 = vsub.f32 1.0, %v88_v34 }
  0x37   :  { %v234_v0 = vsel %vm231_vm4, nan, %v233_v62  ;;  %vm250_vm4 = vcmp.lt.f32.partialorder %v526_v40, 1266679808  ;;  %v272_v30 = vsel %vm271_vm3, 2139095040, %v488_v29  ;;  %vm346_vm14 = vcmp.ne.f32.partialorder %v522_v27, %v345_v55 }
  0x38   :  { %v235_v4 = vsel %vm230_vm6, -inf, %v234_v0  ;;  %vm273_vm6 = vcmp.eq.f32.partialorder %v511_v3, 3212836864  ;;  %v316_v32 = vmul.f32 %v313_v24, %v307_v63  ;;  %vm93_vm3 = vweird.f32 %v599_v23 }
  0x39   :  { %v236_v8 = vsel %vm229_vm5, 0.0, %v235_v4  ;;  %vm257_vm5 = vmand %vm255_vm15, %vm256_vm0  ;;  %v274_v44 = vsel %vm273_vm6, 1065353216, %v272_v30  ;;  %vm241_vm15 = vcmp.eq.f32.partialorder %v518_v17, 0  ;;  %v352_v4 = vand.u32 1, %v351_v58 }
  0x3a   :  { %v237_v11 = vmul.f32 %v236_v8, %v518_v17  ;;  %vm258_vm11 = vmand %vm250_vm4, %vm257_vm5  ;;  %v317_v38 = vadd.f32 0.48090908, %v316_v32  ;;  %vm330_vm4 = vweird.f32 %v516_v16  ;;  %v90_v5 = vmul.f32 %v599_v23, %v89_v60 }
  0x3b   :  { %v278_v47 = vsel %vm258_vm11, %v277_v31, %v276_v21  ;;  %vm329_vm5 = vcmp.lt.f32.partialorder %v516_v16, 0.0  ;;  %vm668_vm6 = vmor %vm346_vm14, %vm338_vm2  ;;  %vm328_vm11 = vcmp.eq.f32.partialorder %v516_v16, 0.0  ;;  %vm360_vm14 = vcmp.gt.f32.partialorder %v516_v16, 1065353216 }
  0x3c   :  { %403 = vpow2.f32 %v237_v11  ;;  %v320_v49 = vmul.f32 %v317_v38, %v307_v63  ;;  %v279_v57 = vsel %vm259_vm1, %v278_v47, %v276_v21  ;;  %v325_v63 = vcvt.s32.f32 %v305_v53 }
  0x3d   :  { %405 = vrcp.f32 %v587_v15  ;;  %vm92_vm1 = vweird.f32 %v545_v59  ;;  %v96_v11 = vand.u32 2147483647, %v545_v59  ;;  %v91_v22 = vadd.f32 %v599_v23, %v90_v5 }
  0x3e   :  { %v321_v54 = vadd.f32 1.442695, %v320_v49  ;;  %v374_v30 = vsel %vm341_vm12, 0, %v487_v20  ;;  %v68_v31 = vmul.f32 -0.5, %v536_v52  ;;  %v99_v20 = vor.u32 1.1754944e-38, %v98_v14 }
  0x3f   :  { %v375_v36 = vxor.u32 2147483648, %v374_v30  ;;  %v364_v49 = vsel %vm341_vm12, 2139095040, %v488_v29  ;;  %v80_v0 = vand.u32 2147483647, %v560_v2 }
  0x40   :  { %v323_v62 = vadd.f32 %v322_v50, %v321_v54  ;;  %v69_v42 = vadd.f32 1.0, %v68_v31 }
  0x42   :  { %v404_v37 = vpop.eup %403  ;;  %v324_v1 = vmul.f32 %v548_v61, %v323_v62  ;;  %v78_v62 = vadd.f32 1.0, %v77_v39 }
  0x43   :  { %v265_v43 = vsel %vm611_vm8, 2143289344, %v404_v37  ;;  %v632_v51 = vpop.eup %405 }
  0x44   :  { %v267_v46 = vsel %vm260_vm10, %v266_v35, %v265_v43  ;;  %vm282_vm10 = vcmp.ne.f32.partialorder %v518_v17, %v518_v17  ;;  %v103_v48 = vmul.f32 %v632_v51, %v587_v15  ;;  %v326_v7 = vadd.f32 %v325_v63, %v324_v1 }
  0x45   :  { %v275_v56 = vsel %vm240_vm7, %v274_v44, %v267_v46  ;;  %vm261_vm7 = vcmp.eq.f32.partialorder %v511_v3, 1065353216  ;;  %vm656_vm0 = vmor %vm281_vm13, %vm282_vm10  ;;  %vm327_vm10 = vcmp.eq.f32.partialorder %v516_v16, 1.0  ;;  %v113_v35 = vand.u32 2147483648, %v587_v15 }
  0x46   :  { %v280_v40 = vsel %vm263_vm9, %v279_v57, %v275_v56  ;;  %v104_v6 = vsub.f32 1.0, %v103_v48  ;;  %vm285_vm8 = vmor %vm261_vm7, %vm241_vm15  ;;  %vm358_vm9 = vcmp.eq.f32.partialorder %v516_v16, 0  ;;  %v331_v10 = vsel %vm330_vm4, %v516_v16, %v326_v7 }
  0x47   :  { %v284_v61 = vsel %vm656_vm0, 2143289344, %v280_v40  ;;  %vm679_vm13 = vmor %vm92_vm1, %vm93_vm3  ;;  %v332_v12 = vsel %vm329_vm5, nan, %v331_v10  ;;  %vm687_vm15 = vcmp.eq.s32.totalorder %v352_v4, 1  ;;  %vm242_vm0 = vcmp.eq.f32.partialorder %v518_v17, 1065353216 }
  0x48   :  { %vm354_vm7 = vmneg %vm668_vm6  ;;  %v286_v18 = vsel %vm285_vm8, 1065353216, %v284_v61  ;;  %v333_v19 = vsel %vm328_vm11, -inf, %v332_v12  ;;  %v105_v24 = vmul.f32 %v632_v51, %v104_v6  ;;  %vm348_vm4 = vcmp.lt.f32.partialorder %v605_v26, 1266679808 }
  0x49   :  { %vm699_vm1 = vmand %vm341_vm12, %vm358_vm9  ;;  %v334_v25 = vsel %vm327_vm10, 0.0, %v333_v19  ;;  %vm107_vm8 = vweird.f32 %v587_v15  ;;  %vm108_vm11 = vweird.f32 %v632_v51  ;;  %v725_v34 = vsel %vm242_vm0, %v511_v3, %v286_v18 }
  0x4a   :  { %vm707_vm3 = vmxor %vm341_vm12, %vm360_vm14  ;;  %v335_v32 = vmul.f32 %v334_v25, %v522_v27  ;;  %v95_v37 = vsel %vm679_vm13, %v599_v23, %v91_v22  ;;  %vm97_vm14 = vcmp.eq.f32.partialorder %v96_v11, 8.507059e+37  ;;  %v106_v38 = vadd.f32 %v632_v51, %v105_v24 }
  0x4b   :  { %vm355_vm5 = vmand %vm687_vm15, %vm354_vm7  ;;  %vm357_vm7 = vcmp.lt.f32.partialorder %v516_v16, 0  ;;  %v129_v23 = vadd.f32 1.0, %v725_v34  ;;  %vm371_vm13 = vcmp.eq.f32.partialorder %v516_v16, 3212836864  ;;  %v114_v45 = vor.u32 1.1754944e-38, %v113_v35 }
  0x4c   :  { %407 = vpow2.f32 %v335_v32  ;;  %vm369_vm10 = vmor %vm699_vm1, %vm707_vm3  ;;  %vm751_vm1 = vcmp.eq.f32.partialorder %v111_v33, 8.507059e+37  ;;  %v132_v54 = vmul.f32 -0.5, %v725_v34  ;;  %v71_v56 = vand.u32 2147483647, %v536_v52 }
  0x4d   :  { %vm356_vm15 = vmand %vm348_vm4, %vm355_vm5  ;;  %409 = vlog2.f32 %v545_v59  ;;  %v370_v43 = vsel %vm369_vm10, 2139095040, %v488_v29  ;;  %v100_v59 = vsel %vm97_vm14, %v99_v20, %v95_v37  ;;  %vm379_vm4 = vcmp.ne.f32.partialorder %v516_v16, %v516_v16 }
  0x4e   :  { %vm743_vm0 = vmor %vm107_vm8, %vm108_vm11  ;;  %411 = vlog2.f32 %v587_v15  ;;  %v376_v47 = vsel %vm356_vm15, %v375_v36, %v374_v30  ;;  %vm380_vm5 = vcmp.ne.f32.partialorder %v522_v27, %v522_v27  ;;  %vm359_vm8 = vcmp.eq.f32.partialorder %v516_v16, 1065353216 }
  0x4f   :  { %vm759_vm3 = vmand %vm357_vm7, %vm668_vm6  ;;  %v110_v15 = vsel %vm743_vm0, %v632_v51, %v106_v38  ;;  %vm339_vm6 = vcmp.eq.f32.partialorder %v522_v27, 0  ;;  %v372_v53 = vsel %vm371_vm13, 1065353216, %v370_v43  ;;  %413 = vlog2.f32 %v129_v23 }
  0x50   :  { %vm361_vm11 = vcmp.eq.f32.partialorder %v516_v16, 2139095040  ;;  %v377_v29 = vsel %vm357_vm7, %v376_v47, %v374_v30  ;;  %v83_v57 = vmul.f32 28.0, %v518_v17  ;;  %vm788_vm12 = vmor %vm379_vm4, %vm380_vm5  ;;  %v84_v63 = vmul.f32 28.0, %v522_v27 }
  0x51   :  { %v115_v40 = vsel %vm751_vm1, %v114_v45, %v110_v15  ;;  %v101_v1 = vmul.f32 %v536_v52, %v100_v59  ;;  %vm340_vm10 = vcmp.eq.f32.partialorder %v522_v27, 1065353216  ;;  %v70_v6 = vmul.f32 %v536_v52, %v69_v42 }
  0x52   :  { %v408_v50 = vpop.eup %407  ;;  %v133_v7 = vadd.f32 1.0, %v132_v54  ;;  %v116_v9 = vmul.f32 %v560_v2, %v115_v40  ;;  %v135_v27 = vand.u32 2147483647, %v725_v34  ;;  %v79_v12 = vmul.f32 %v560_v2, %v78_v62 }
  0x53   :  { %v363_v51 = vsel %vm759_vm3, 2143289344, %v408_v50  ;;  %v410_v55 = vpop.eup %409  ;;  %vm818_vm14 = vcmp.lt.f32.partialorder %v80_v0, 0.0004427343  ;;  %v117_v18 = vmul.f32 %v101_v1, %v83_v57  ;;  %v191_v2 = vadd.f32 -0.5, %v516_v16 }
  0x54   :  { %v365_v58 = vsel %vm358_vm9, %v364_v49, %v363_v51  ;;  %v412_v48 = vpop.eup %411  ;;  %vm383_vm9 = vmor %vm359_vm8, %vm339_vm6  ;;  %v67_v5 = vmul.f32 0.6931472, %v410_v55  ;;  %v134_v25 = vmul.f32 %v725_v34, %v133_v7  ;;  %v118_v28 = vmul.f32 %v116_v9, %v84_v63 }
  0x55   :  { %v373_v17 = vsel %vm338_vm2, %v372_v53, %v365_v58  ;;  %v414_v8 = vpop.eup %413  ;;  %vm809_vm2 = vcmp.lt.f32.partialorder %v71_v56, 0.0004427343  ;;  %v76_v11 = vmul.f32 0.6931472, %v412_v48  ;;  %vm136_vm15 = vcmp.lt.f32.partialorder %v135_v27, 0.0004427343 }
  0x56   :  { %v378_v4 = vsel %vm361_vm11, %v377_v29, %v373_v17  ;;  %v73_v22 = vsel %vm809_vm2, %v70_v6, %v67_v5  ;;  %v131_v24 = vmul.f32 0.6931472, %v414_v8  ;;  %v121_v32 = vmul.f32 %v190_v13, %v117_v18 }
  0x57   :  { %v382_v26 = vsel %vm788_vm12, 2143289344, %v378_v4  ;;  %v82_v30 = vsel %vm818_vm14, %v79_v12, %v76_v11  ;;  %v123_v33 = vmul.f32 14.0, %v73_v22  ;;  %v122_v36 = vmul.f32 %v191_v2, %v118_v28 }
  0x58   :  { %v384_v10 = vsel %vm383_vm9, 1065353216, %v382_v26  ;;  %v137_v35 = vsel %vm136_vm15, %v134_v25, %v131_v24  ;;  %v124_v37 = vmul.f32 14.0, %v82_v30  ;;  %vm149_vm0 = vcmp.ge.f32.partialorder %v511_v3, 0.5 }
  0x59   :  { %v385_v52 = vsel %vm340_vm10, %v516_v16, %v384_v10  ;;  %v125_v41 = vadd.f32 %v123_v33, %v121_v32  ;;  %v147_v34 = vmul.f32 14.0, %v137_v35  ;;  %vm150_vm13 = vcmp.ge.f32.partialorder %v516_v16, 0.5 }
  0x5a   :  { %v138_v19 = vadd.f32 1.0, %v385_v52  ;;  %v141_v21 = vmul.f32 -0.5, %v385_v52  ;;  %v144_v20 = vand.u32 2147483647, %v385_v52  ;;  %v126_v42 = vadd.f32 %v124_v37, %v122_v36 }
  0x5b   :  { %v151_v44 = vsel %vm149_vm0, %v125_v41, %v147_v34 }
  0x5c   :  { %415 = vlog2.f32 %v138_v19  ;;  %v142_v31 = vadd.f32 1.0, %v141_v21  ;;  %vm145_vm7 = vcmp.lt.f32.partialorder %v144_v20, 0.0004427343 }
  0x5e   :  { %v143_v38 = vmul.f32 %v385_v52, %v142_v31 }
  0x62   :  { %v416_v39 = vpop.eup %415 }
  0x63   :  { %v140_v23 = vmul.f32 0.6931472, %v416_v39 }
  0x65   :  { %v146_v43 = vsel %vm145_vm7, %v143_v38, %v140_v23 }
  0x66   :  { %v148_v59 = vmul.f32 14.0, %v146_v43 }
  0x68   :  { %v152_v45 = vsel %vm150_vm13, %v126_v42, %v148_v59 }
  0x69   :  { %v154_v46 = vadd.f32 %v152_v45, %v151_v44 }
  0x6b   :  { %161 = vadd.xlane.f32.xlu0 %v154_v46 }
  0xde   :  { %v162_v47 = vpop.xlane.xlu0 %161 }
  0xdf   :  { %v163_v15 = vrot.slane %v162_v47, 4 }
  0xe1   :  { %v164_v49 = vadd.f32 %v163_v15, %v162_v47 }
  0xe3   :  { %v165_v50 = vrot.slane %v164_v49, 2 }
  0xe5   :  { %v166_v53 = vadd.f32 %v165_v50, %v164_v49 }
  0xe7   :  { %v167_v51 = vrot.slane %v166_v53, 1 }
  0xe9   :  { %v168_v29 = vadd.f32 %v167_v51, %v166_v53 }
  0xeb   :  { %388 = vpush %v168_v29 }
 0x11c   :  { %s389_s22 = spop %388 }
 0x11d   :  { %s170_s23 = smul.f32 0.00048828125, %s389_s22 }
 0x11f   :  { %172 = sst [smem:[#allocation8]] %s170_s23 }
 0x120   :  { %181 = dma.smem_to_hbm %s489_s24, 16, %s179_s21, [#allocation5]  }
 0x121   :  { %481 = dma.done.wait [#allocation5], 16  }
 0x122   :  { %482 = vsyncadd [#allocation5], 4294967280 }
 0x123   :  { %186 = sfence }
 0x124   :  { %187 = vsyncpa [#allocation4], 1 }
 0x125   :  { %188 = vsyncpa [#allocation7], 1 }
 0x126   :  { %189 = vsyncpa [#allocation5], 1 }

</bundles_post_ra>
